<compile_context>
chip_gen: v7x
topology: tpu7x:2x2x1
jax: 0.10.0
libtpu: 0.0.40
codegen_flags: <defaults>
</compile_context>

<pallas_src>
import functools

import jax
import jax.numpy as jnp
from jax.experimental import pallas as pl
from jax.experimental.pallas import tpu as pltpu


# --------------------------------------------------------------------------
# Kernel 1: convolution (banded-matmul form) + per-block BN partial stats.
#   grid = (num_image_blocks, num_col_tiles), both "parallel".
# --------------------------------------------------------------------------
def _conv_stats_kernel(x_ref, w_ref, y_ref, s_ref, *, kh, oh, stride, nb):
    # x_ref: (nb, PH, PW*Cin)   padded images (bf16), rows flat over (W, Cin)
    # w_ref: (kh, PW*Cin, TN)   banded weights (bf16), VMEM-resident over n
    # y_ref: (nb, OH, TN)       conv output tile (bf16, lane-dense layout)
    # s_ref: (1, 2, TN)         per-block partial (sum, sum-of-squares), f32
    tn = w_ref.shape[-1]
    acc = jnp.zeros((nb * oh, tn), jnp.float32)
    for dh in range(kh):                       # kernel-row taps, unrolled
        per_img = []
        for b in range(nb):                    # stack images -> bigger MXU M
            if stride == 1:
                rows = x_ref[b, dh:dh + oh, :]
            else:
                # TODO(synk): strided Ref reads are not interpreter-safe; this
                # static-row gather is correct but slow for stride > 1.
                rows = jnp.concatenate(
                    [x_ref[b, dh + stride * i:dh + stride * i + 1, :]
                     for i in range(oh)], axis=0)
            per_img.append(rows)
        rows_all = per_img[0] if nb == 1 else jnp.concatenate(per_img, axis=0)
        acc = acc + jnp.dot(rows_all, w_ref[dh],
                            preferred_element_type=jnp.float32)
    y_ref[...] = acc.reshape(nb, oh, tn).astype(y_ref.dtype)
    # BN train-mode statistics fused into the conv epilogue (from f32 acc).
    s_ref[0] = jnp.concatenate(
        [jnp.sum(acc, axis=0, keepdims=True),
         jnp.sum(acc * acc, axis=0, keepdims=True)], axis=0)


# --------------------------------------------------------------------------
# Kernel 2: BN normalize (folded scale/shift) + ReLU + MaxPool(3, stride 2).
#   grid = (num_image_blocks,), "parallel".  Only static slices are used.
# --------------------------------------------------------------------------
def _bn_relu_pool_kernel(y_ref, sc_ref, sh_ref, o_ref, *,
                         pool_k, pool_s, cout, php, pw_groups):
    # y_ref: (nb, OH, OW*Cout)          conv output (bf16)
    # sc/sh: (1, OW*Cout)               folded BN scale / shift (f32), resident
    # o_ref: (nb, PHp, pw_groups*Cout)  pooled max at EVERY W window start
    scale = sc_ref[...]
    shift = sh_ref[...]
    # BN + ReLU hoisted: applied once to the full block (no per-window redo).
    z = jnp.maximum(y_ref[...].astype(jnp.float32) * scale + shift, 0.0)
    # W max over the pool_k-wide window via static lane slices (no wrap).
    # (Computes all OW-pool_k+1 window starts; the stride-2 start pick is a
    #  tiny lane-gather left to the wrapper for portability.)
    pww = pw_groups * cout
    m = z[:, :, 0:pww]
    for dw in range(1, pool_k):
        m = jnp.maximum(m, z[:, :, dw * cout:dw * cout + pww])
    # H max with stride pool_s via static sublane slices (unrolled over PHp).
    out_rows = []
    for ph in range(php):
        r = m[:, pool_s * ph, :]
        for dh in range(1, pool_k):
            r = jnp.maximum(r, m[:, pool_s * ph + dh, :])
        out_rows.append(r.reshape(r.shape[0], 1, pww))
    o_ref[...] = out_rows[0] if php == 1 else jnp.concatenate(out_rows, axis=1)


def _pick_image_block(n, oh):
    """Images folded per grid step: target ~256 MXU rows but keep >=2 steps."""
    if n <= 1:
        return 1
    nb = min(max(1, n // 2), max(1, -(-256 // oh)))
    while n % nb:
        nb -= 1
    return nb


def _pick_col_tile(owc):
    """Lane tile of the banded weight; 256/128-aligned when tiling is needed."""
    if owc <= 512:
        return owc
    for t in (512, 384, 256, 128):
        if owc % t == 0:
            return t
    return owc


def base_conv_forward(x_nchw, weight, gamma, beta, *,
                      stride=1, padding=0, eps=1e-5, pool_k=3, pool_s=2):
    N, Cin, H, W = x_nchw.shape
    Cout, Cin_w, kh, kw = weight.shape
    assert Cin == Cin_w
    PH, PW = H + 2 * padding, W + 2 * padding
    OH = (PH - kh) // stride + 1
    OW = (PW - kw) // stride + 1
    assert OH >= pool_k and OW >= pool_k, "spatial size too small for MaxPool(3,2)"
    PHp = (OH - pool_k) // pool_s + 1
    PWp = (OW - pool_k) // pool_s + 1
    PWC, OWC = PW * Cin, OW * Cout
    PWG = OW - pool_k + 1                      # W pool window starts kept in-kernel

    nb = _pick_image_block(N, OH)
    n_blocks = N // nb
    TN = _pick_col_tile(OWC)
    n_col = OWC // TN

    # glue: NCHW -> NHWC, zero-pad, flatten rows to (PW*Cin,), cast to bf16
    # once here (halves input DMA; no per-tap casts inside the kernel).
    x = jnp.transpose(x_nchw, (0, 2, 3, 1)).astype(jnp.float32)
    x = jnp.pad(x, ((0, 0), (padding, padding), (padding, padding), (0, 0)))
    x_rows = x.reshape(N, PH, PWC).astype(jnp.bfloat16)

    # glue: banded (block-Toeplitz) weights, one matrix per kernel row dh:
    #   W_band[dh, p*Cin+ci, ow*Cout+c] = weight[c, ci, dh, p - stride*ow]
    # when 0 <= p - stride*ow < kw, else 0.  Built once; bf16 for the MXU.
    # TODO(synk): only kw*Cin of the PW*Cin K-rows are nonzero per output
    # column group (~PW/kw redundant MXU FLOPs); switch to an ow-tiled or
    # in-VMEM im2col formulation once a real-size layer becomes MXU-bound.
    wk = jnp.transpose(weight, (2, 3, 1, 0))                    # (kh, kw, Cin, Cout)
    dw_rel = jnp.arange(PW)[None, :] - stride * jnp.arange(OW)[:, None]   # (OW, PW)
    valid = (dw_rel >= 0) & (dw_rel < kw)
    wb = wk[:, jnp.clip(dw_rel, 0, kw - 1)]                     # (kh, OW, PW, Cin, Cout)
    wb = jnp.where(valid[None, :, :, None, None], wb, 0.0)
    w_band = (wb.transpose(0, 2, 3, 1, 4)
                .reshape(kh, PWC, OWC).astype(jnp.bfloat16))

    # Explicit VMEM budget: resident weight tile + double-buffered x/y/stat
    # tiles, with generous headroom (matters at real layer sizes on v7x).
    vmem_need = (kh * PWC * TN * 2
                 + 2 * (nb * PH * PWC * 2 + nb * OH * TN * 2 + 2 * TN * 4))
    vmem_limit = int(min(100 * 2**20, max(8 * 2**20, 4 * vmem_need)))

    # ---- Pallas kernel 1: conv + fused BN partial statistics ----
    conv_y, part_stats = pl.pallas_call(
        functools.partial(_conv_stats_kernel, kh=kh, oh=OH, stride=stride, nb=nb),
        out_shape=(jax.ShapeDtypeStruct((N, OH, OWC), jnp.bfloat16),
                   jax.ShapeDtypeStruct((n_blocks, 2, OWC), jnp.float32)),
        grid_spec=pltpu.PrefetchScalarGridSpec(
            num_scalar_prefetch=0,
            grid=(n_blocks, n_col),
            in_specs=[
                pl.BlockSpec((nb, PH, PWC), lambda n, j: (n, 0, 0)),
                pl.BlockSpec((kh, PWC, TN), lambda n, j: (0, 0, j)),  # resident over n
            ],
            out_specs=[
                pl.BlockSpec((nb, OH, TN), lambda n, j: (n, 0, j)),
                pl.BlockSpec((1, 2, TN), lambda n, j: (n, 0, j)),
            ]),
        compiler_params=pltpu.CompilerParams(
            dimension_semantics=("parallel", "parallel"),
            vmem_limit_bytes=vmem_limit),
    )(x_rows, w_band)

    # glue: fold train-mode BN (biased batch variance, as PyTorch normalizes
    # with) into per-channel scale/shift, tiled into the fused (OW*Cout,) lane
    # layout so kernel 2 applies it with pure lane-aligned VPU ops.
    # NOTE: single-pass E[x^2]-E[x]^2 in f32; clamped to >= 0 before +eps.
    s = jnp.sum(part_stats, axis=0).reshape(2, OW, Cout).sum(axis=1)   # (2, Cout)
    cnt = float(N * OH * OW)
    mean = s[0] / cnt
    var = jnp.maximum(s[1] / cnt - mean * mean, 0.0)
    inv = gamma.astype(jnp.float32) * jax.lax.rsqrt(var + eps)
    scale_f = jnp.tile(inv, OW).reshape(1, OWC)
    shift_f = jnp.tile(beta.astype(jnp.float32) - mean * inv, OW).reshape(1, OWC)

    # ---- Pallas kernel 2: BN + ReLU + MaxPool(3, 2) ----
    pooled_wide = pl.pallas_call(
        functools.partial(_bn_relu_pool_kernel, pool_k=pool_k, pool_s=pool_s,
                          cout=Cout, php=PHp, pw_groups=PWG),
        out_shape=jax.ShapeDtypeStruct((N, PHp, PWG * Cout), jnp.float32),
        grid_spec=pltpu.PrefetchScalarGridSpec(
            num_scalar_prefetch=0,
            grid=(n_blocks,),
            in_specs=[
                pl.BlockSpec((nb, OH, OWC), lambda n: (n, 0, 0)),
                pl.BlockSpec((1, OWC), lambda n: (0, 0)),           # resident
                pl.BlockSpec((1, OWC), lambda n: (0, 0)),           # resident
            ],
            out_specs=pl.BlockSpec((nb, PHp, PWG * Cout), lambda n: (n, 0, 0))),
        compiler_params=pltpu.CompilerParams(
            dimension_semantics=("parallel",)),
    )(conv_y, scale_f, shift_f)

    # glue: keep the stride-pool_s window starts (tiny strided pick) -> NCHW.
    pooled = (pooled_wide.reshape(N, PHp, PWG, Cout)
              [:, :, 0:pool_s * (PWp - 1) + 1:pool_s, :])          # (N, PHp, PWp, Cout)
    return jnp.transpose(pooled, (0, 3, 1, 2))


if __name__ == "__main__":
    key = jax.random.PRNGKey(0)
    k_x, k_w, k_g, k_b = jax.random.split(key, 4)

    # BaseConv(inplane=4, outplane=8, kernel_size=3, stride=1, padding=1,
    #          use_bn=True, use_maxpool=True)
    N, Cin, H, W = 2, 4, 16, 16
    Cout, ksz, stride, padding = 8, 3, 1, 1

    x = jax.random.normal(k_x, (N, Cin, H, W), dtype=jnp.float32)
    weight = 0.1 * jax.random.normal(k_w, (Cout, Cin, ksz, ksz), dtype=jnp.float32)
    gamma = 1.0 + 0.1 * jax.random.normal(k_g, (Cout,), dtype=jnp.float32)
    beta = 0.1 * jax.random.normal(k_b, (Cout,), dtype=jnp.float32)

    out = base_conv_forward(x, weight, gamma, beta, stride=stride, padding=padding)
    out = jax.block_until_ready(out)

    OH = (H + 2 * padding - ksz) // stride + 1
    PHp = (OH - 3) // 2 + 1
    assert out.shape == (N, Cout, PHp, PHp), out.shape
    print("KERNEL_OK")
</pallas_src>

<mosaic_0001>
module attributes {stable_mosaic.version = 11 : i64} {
  func.func @_conv_stats_kernel(%arg0: i32, %arg1: i32, %arg2: memref<1x18x72xbf16, #tpu.memory_space<vmem>>, %arg3: memref<3x72x128xbf16, #tpu.memory_space<vmem>>, %arg4: memref<1x16x128xbf16, #tpu.memory_space<vmem>>, %arg5: memref<1x2x128xf32, #tpu.memory_space<vmem>>) attributes {dimension_semantics = [#tpu.dimension_semantics<parallel>, #tpu.dimension_semantics<parallel>], iteration_bounds = array<i64: 2, 1>, scalar_prefetch = 0 : i64, scratch_operands = 0 : i64, tpu.core_type = #tpu.core_type<tc>, window_params = [{transform_indices = @transform_0, window_bounds = array<i64: 1, 18, 72>}, {transform_indices = @transform_1, window_bounds = array<i64: 3, 72, 128>}, {transform_indices = @transform_2, window_bounds = array<i64: 1, 16, 128>}, {transform_indices = @transform_3, window_bounds = array<i64: 1, 2, 128>}]} {
    %cst = arith.constant 0.000000e+00 : f32
    %0 = vector.broadcast %cst : f32 to vector<16x128xf32>
    %c0 = arith.constant 0 : index
    %c0_0 = arith.constant 0 : index
    %c0_1 = arith.constant 0 : index
    %1 = vector.load %arg2[%c0, %c0_0, %c0_1] : memref<1x18x72xbf16, #tpu.memory_space<vmem>>, vector<1x16x72xbf16>
    %2 = vector.shape_cast %1 : vector<1x16x72xbf16> to vector<16x72xbf16>
    %c0_2 = arith.constant 0 : index
    %c0_3 = arith.constant 0 : index
    %c0_4 = arith.constant 0 : index
    %3 = vector.load %arg3[%c0_2, %c0_3, %c0_4] : memref<3x72x128xbf16, #tpu.memory_space<vmem>>, vector<1x72x128xbf16>
    %4 = vector.shape_cast %3 : vector<1x72x128xbf16> to vector<72x128xbf16>
    %cst_5 = arith.constant dense<0.000000e+00> : vector<16x128xf32>
    %5 = tpu.matmul %2, %4, %cst_5 {dimension_numbers = #tpu.dot_dimension_numbers<[1], [0], [0], [1], [0, 0, 1, 1], [], []>} : vector<16x72xbf16>, vector<72x128xbf16>, vector<16x128xf32> -> vector<16x128xf32>
    %6 = arith.addf %0, %5 : vector<16x128xf32>
    %c0_6 = arith.constant 0 : index
    %c1 = arith.constant 1 : index
    %c0_7 = arith.constant 0 : index
    %7 = vector.load %arg2[%c0_6, %c1, %c0_7] : memref<1x18x72xbf16, #tpu.memory_space<vmem>>, vector<1x16x72xbf16>
    %8 = vector.shape_cast %7 : vector<1x16x72xbf16> to vector<16x72xbf16>
    %c1_8 = arith.constant 1 : index
    %c0_9 = arith.constant 0 : index
    %c0_10 = arith.constant 0 : index
    %9 = vector.load %arg3[%c1_8, %c0_9, %c0_10] : memref<3x72x128xbf16, #tpu.memory_space<vmem>>, vector<1x72x128xbf16>
    %10 = vector.shape_cast %9 : vector<1x72x128xbf16> to vector<72x128xbf16>
    %cst_11 = arith.constant dense<0.000000e+00> : vector<16x128xf32>
    %11 = tpu.matmul %8, %10, %cst_11 {dimension_numbers = #tpu.dot_dimension_numbers<[1], [0], [0], [1], [0, 0, 1, 1], [], []>} : vector<16x72xbf16>, vector<72x128xbf16>, vector<16x128xf32> -> vector<16x128xf32>
    %12 = arith.addf %6, %11 : vector<16x128xf32>
    %c0_12 = arith.constant 0 : index
    %c2 = arith.constant 2 : index
    %c0_13 = arith.constant 0 : index
    %13 = vector.load %arg2[%c0_12, %c2, %c0_13] : memref<1x18x72xbf16, #tpu.memory_space<vmem>>, vector<1x16x72xbf16>
    %14 = vector.shape_cast %13 : vector<1x16x72xbf16> to vector<16x72xbf16>
    %c2_14 = arith.constant 2 : index
    %c0_15 = arith.constant 0 : index
    %c0_16 = arith.constant 0 : index
    %15 = vector.load %arg3[%c2_14, %c0_15, %c0_16] : memref<3x72x128xbf16, #tpu.memory_space<vmem>>, vector<1x72x128xbf16>
    %16 = vector.shape_cast %15 : vector<1x72x128xbf16> to vector<72x128xbf16>
    %cst_17 = arith.constant dense<0.000000e+00> : vector<16x128xf32>
    %17 = tpu.matmul %14, %16, %cst_17 {dimension_numbers = #tpu.dot_dimension_numbers<[1], [0], [0], [1], [0, 0, 1, 1], [], []>} : vector<16x72xbf16>, vector<72x128xbf16>, vector<16x128xf32> -> vector<16x128xf32>
    %18 = arith.addf %12, %17 : vector<16x128xf32>
    %19 = vector.shape_cast %18 : vector<16x128xf32> to vector<1x16x128xf32>
    %20 = arith.truncf %19 : vector<1x16x128xf32> to vector<1x16x128xbf16>
    %c0_18 = arith.constant 0 : index
    %c0_19 = arith.constant 0 : index
    %c0_20 = arith.constant 0 : index
    %21 = vector.load %arg4[%c0_18, %c0_19, %c0_20] : memref<1x16x128xbf16, #tpu.memory_space<vmem>>, vector<1x16x128xbf16>
    tpu.vector_store %arg4[%c0_18, %c0_19, %c0_20], %20 {strides = array<i32>} : memref<1x16x128xbf16, #tpu.memory_space<vmem>>, vector<1x16x128xbf16>,
    %cst_21 = arith.constant dense<0.000000e+00> : vector<128xf32>
    %22 = vector.multi_reduction <add>, %18, %cst_21 [0] : vector<16x128xf32> to vector<128xf32>
    %23 = vector.shape_cast %22 : vector<128xf32> to vector<1x128xf32>
    %24 = arith.mulf %18, %18 : vector<16x128xf32>
    %cst_22 = arith.constant dense<0.000000e+00> : vector<128xf32>
    %25 = vector.multi_reduction <add>, %24, %cst_22 [0] : vector<16x128xf32> to vector<128xf32>
    %26 = vector.shape_cast %25 : vector<128xf32> to vector<1x128xf32>
    %27 = tpu.concatenate %23, %26 in 0 : vector<1x128xf32>, vector<1x128xf32> -> vector<2x128xf32>
    %c0_23 = arith.constant 0 : index
    %c0_24 = arith.constant 0 : index
    %c0_25 = arith.constant 0 : index
    %28 = vector.load %arg5[%c0_23, %c0_24, %c0_25] : memref<1x2x128xf32, #tpu.memory_space<vmem>>, vector<1x2x128xf32>
    %29 = vector.shape_cast %28 : vector<1x2x128xf32> to vector<2x128xf32>
    %30 = vector.shape_cast %27 : vector<2x128xf32> to vector<1x2x128xf32>
    tpu.vector_store %arg5[%c0_23, %c0_24, %c0_25], %30 {strides = array<i32>} : memref<1x2x128xf32, #tpu.memory_space<vmem>>, vector<1x2x128xf32>,
    return
  }
  func.func @transform_0(%arg0: i32, %arg1: i32) -> (i32, i32, i32) {
    %c0_i32 = arith.constant 0 : i32
    %c0_i32_0 = arith.constant 0 : i32
    %c0_i32_1 = arith.constant 0 : i32
    return %arg0, %c0_i32, %c0_i32_0 : i32, i32, i32
  }
  func.func @transform_1(%arg0: i32, %arg1: i32) -> (i32, i32, i32) {
    %c0_i32 = arith.constant 0 : i32
    %c0_i32_0 = arith.constant 0 : i32
    %c0_i32_1 = arith.constant 0 : i32
    return %c0_i32, %c0_i32_0, %arg1 : i32, i32, i32
  }
  func.func @transform_2(%arg0: i32, %arg1: i32) -> (i32, i32, i32) {
    %c0_i32 = arith.constant 0 : i32
    %c0_i32_0 = arith.constant 0 : i32
    return %arg0, %c0_i32, %arg1 : i32, i32, i32
  }
  func.func @transform_3(%arg0: i32, %arg1: i32) -> (i32, i32, i32) {
    %c0_i32 = arith.constant 0 : i32
    %c0_i32_0 = arith.constant 0 : i32
    return %arg0, %c0_i32, %arg1 : i32, i32, i32
  }
}

</mosaic_0001>

<bundles_post_ra>
// kernel: tpu_custom_call.1
= control target key start
LH: loop header
LB: loop body
LE: loop exit
PB: predicated region body
PF: predicated region fallthrough
CT: control target
= control target key end

     0   :  { %9 = vsyncpa [#allocation3], 0  ;;  %s1290_s0 = inlined_call_operand.vmem [shape: bf16[2,18,72], index: 0, kind: input, shape index: {}]   ;;  %s1291_s1 = inlined_call_operand.hbm [shape: bf16[3,72,128], index: 1, kind: input, shape index: {}]   ;;  %s1292_s2 = inlined_call_operand.hbm [shape: bf16[2,16,128], index: 2, kind: output, shape index: {0}]   ;;  %s1293_s3 = inlined_call_operand.hbm [shape: f32[2,2,128], index: 3, kind: output, shape index: {1}]  }
   0x1   :  { %10 = vsyncpa [#allocation4], 0 }
   0x2   :  { %12 = vsyncpa [#allocation4 + $0x1], 0 }
   0x3   :  { %13 = vsyncpa [#allocation7], 0 }
   0x4   :  { %15 = vsyncpa [#allocation7 + $0x1], 0  ;;  %s1070_s12 = smov 0   ;;  %s1072_s13 = smov 0  }
   0x5   :  { %s1074_s14 = smov 0   ;;  %s1076_s15 = smov 0  }
   0x6   :  { %s1078_s16 = smov 0   ;;  %s1080_s17 = smov 0  }
   0x7 LB: > { %s687_s18 = sadd.s32 4294967295, %s1039_s17   ;;  %s688_s19 = sadd.s32 4294967294, %s1039_s17   ;;  %s1039_s17 = sphi %s1080_s17, %s21_s17   ;;  %s1035_s16 = sphi %s1078_s16, %s1311_s16   ;;  %s1031_s15 = sphi %s1076_s15, %s1310_s15   ;;  %s1027_s14 = sphi %s1074_s14, %s1309_s14   ;;  %s1023_s13 = sphi %s1072_s13, %s1308_s13   ;;  %s1019_s12 = sphi %s1070_s12, %s1307_s12  }
   0x8   : > { %s33_s20 = sadd.s32 1, %s1035_s16  ;;  %s94_s21 = sadd.s32 1, %s1027_s14 }
   0x9   : > { %p35_p0 = scmp.ge.s32.totalorder %s33_s20, 2  ;;  %p104_p1 = scmp.ne.s32.totalorder %s1027_s14, %s1023_s13 }
   0xa   : > { %p105_p2 = scmp.eq.s32.totalorder %s687_s18, 1  ;;  %p110_p3 = scmp.ne.s32.totalorder %s1023_s13, %s1019_s12 }
   0xb   : > { %s1313_s20 = smov (%p35_p0, %s33_s20), 0  ;;  %p111_p5 = scmp.eq.s32.totalorder %s688_s19, 1 }
   0xc   : > { %p1110_p4 = por %p105_p2, %p104_p1  ;;  %s89_s23 = ssub.s32 %s1035_s16, %s1313_s20 }
   0xd   : > { %p689_p6 = scmp.ge.s32.totalorder %s1039_s17, 1  ;;  %p92_p7 = scmp.eq.s32.totalorder %s89_s23, 0 }
   0xe   : > { %s1298_s22 = scalar_select %p1110_p4, 1, 0 }
   0xf   : > { %p1117_p8 = por %p111_p5, %p110_p3  ;;  %p146_p9 = scmp.lt.s32.totalorder %s1039_s17, 3 }
  0x10   : > { %s1123_s25 = scalar_select %p92_p7, %s1027_s14, %s94_s21  }
  0x11   : > { %s1299_s24 = scalar_select %p1117_p8, 1, 0 }
  0x12   : > { %p1125_p10 = pnand %p689_p6, %p146_p9  ;;  %p1129_p11 = scmp.eq.s32.totalorder %s687_s18, 0 }
  0x13   : > { %s1041_s28 = smov [#allocation2]   ;;  %s897_s6 = scalar_lea.hbm %s1291_s1, 1728 }
  0x14   : > { %s1300_s26 = scalar_select %p1125_p10, 1, 0 }
  0x15   : > { %s1301_s27 = scalar_select %p1129_p11, 1, 0 }
  0x16   : > { %p810_p12 = pneg %p1125_p10  ;;  %s160_s29 = sshll.u32 %s1041_s28, 4  ;;  %s161_s29 = int_to_ptr.vmem [resolvable:$true] %s160_s29 }
  0x17   : > { %p898_p0 = scmp.ne.s32.totalorder %s1291_s1, %s897_s6  ;;  %p904_p5 = scmp.lt.u32.totalorder %s897_s6, %s1291_s1 }
  0x18   : > { %p1137_p13 = pnand %p1129_p11, %p810_p12 }
  0x1a   : > { %p899_p1 = pneg %p1137_p13 }
  0x1c   : > { %p900_p2 = pnand %p899_p1, %p898_p0 }
  0x1e   : > { %p901_p3 = pneg %p900_p2 }
  0x20   : > { %p906_p6 = pnand %p904_p5, %p901_p3 }
  0x22   : > { %909 = shalt.err (!%p906_p6)
}
  0x23   : > { %s910_s11 = scalar_lea.vmem %s161_s29, 1728  ;;  %p918_p8 = scmp.lt.s32.totalorder %s161_s29, %s161_s29 }
  0x24   : > { %p911_p7 = scmp.ne.s32.totalorder %s161_s29, %s910_s11  ;;  %p919_p4 = scmp.lt.s32.totalorder %s910_s11, %s910_s11 }
  0x26   : > { %p913_p9 = pnand %p911_p7, %p899_p1  ;;  %p920_p11 = por %p919_p4, %p918_p8 }
  0x28   : > { %p914_p12 = pneg %p913_p9 }
  0x2a   : > { %p921_p10 = pnand %p920_p11, %p914_p12 }
  0x2c   : > { %924 = shalt.err (!%p921_p10)
}
  0x2d   : > { %s1042_s18 = smov 64   ;;  %s1043_s19 = smov 4  }
  0x2e   : > { %813 = dma.hbm_to_vmem [thread:$0]  (!%p1137_p13), %s1291_s1, 1728, %s161_s29, [#allocation3], %s1042_s18, %s1042_s18, %s1043_s19  }
  0x2f   : > { %p1303_p0 = scmp.ne.s32.totalorder %s1300_s26, 0 }
  0x30   : > { %p1304_p2 = scmp.ne.s32.totalorder (!%p1303_p0), %s1301_s27, 0 }
  0x31   : > { %184 = sbr.rel (%p1303_p0) target bundleno = 357 (0x165), region = 28 }
  0x38   : > { %1006 = dma.done.wait (%p1304_p2), [#allocation3], 1728  }
  0x39   : > { %1008 = vsyncadd (%p1304_p2), [#allocation3], 4294965568  ;;  %p213_p4 = scmp.lt.s32.totalorder %s1031_s15, 1  ;;  %v1044_v0 = vmov 0.0   ;;  %vm1045_vm0 = vmmov 0   ;;  %v879_v1 = vld [vmem:[#allocation2] sm:$0xff]  }
  0x3a   : > { %767 = vmatprep.subr.bf16.mxu0 %v1044_v0  ;;  %753 = vmatprep.subr.bf16.mxu1 %v1044_v0  ;;  %v880_v2 = vld [vmem:[#allocation2 + $0x8] sm:$0xff]   ;;  %v881_v4 = vld [vmem:[#allocation2 + $0x10] sm:$0xff]   ;;  %v882_v8 = vld [vmem:[#allocation2 + $0x18] sm:$0xff]   ;;  %vm293_vm1 = vcmask 1043456   ;;  %vm289_vm2 = vcmask 588800   ;;  %vm425_vm4 = vcmask 1046528  }
  0x3b   : > { %777 = vmatprep.mubr.msk.bf16.mxu0 %vm1045_vm0, %v1044_v0  ;;  %s214_s26 = scalar_select %p213_p4, %s1031_s15, 1  ;;  %763 = vmatprep.mubr.msk.bf16.mxu1 %vm1045_vm0, %v1044_v0  ;;  %v884_v3 = vld [vmem:[#allocation2 + $0x24] sm:$0xff]   ;;  %v888_v7 = vld [vmem:[#allocation2 + $0x2c] sm:$0xff]   ;;  %v883_v10 = vld [vmem:[#allocation2 + $0x20] ss:$0 sps:$4 sm:$0xff]  }
  0x3c   : > { %768 = vmatpush3.bf16.msra.mxu0 %v879_v1  ;;  %754 = vmatpush3.bf16.msra.mxu1 %v884_v3  ;;  %v890_v11 = vld [vmem:[#allocation2 + $0x34] sm:$0xff]   ;;  %v368_v13 = vsel %vm293_vm1, %v883_v10, 0  ;;  %v892_v14 = vld [vmem:[#allocation2 + $0x3c] sm:$0xff]   ;;  %v894_v18 = vld [vmem:[#allocation2 + $0x44] ss:$0 sps:$4 sm:$0xff]   ;;  %s1202_s4 = sand.u32 1, %s1023_s13  }
  0x3d   : > { %s801_s28 = smul.u32 12, %s214_s26  ;;  %769 = vmatprep.subr.bf16.mxu0 %v1044_v0  ;;  %755 = vmatprep.subr.bf16.mxu1 %v1044_v0  ;;  %v887_v20 = vld [vmem:[#allocation2 + $0x48] sm:$0xff]   ;;  %v295_v23 = vsel %vm293_vm1, %v894_v18, 0  ;;  %vm249_vm3 = vsmask.f32 7424  ;;  %v889_v24 = vld [vmem:[#allocation2 + $0x50] sm:$0xff]  }
  0x3e   : > { %v891_v26 = vld [vmem:[#allocation2 + $0x58] sm:$0xff]   ;;  %v893_v29 = vld [vmem:[#allocation2 + $0x60] sm:$0xff]   ;;  %v896_v30 = vld [vmem:[#allocation2 + $0x68] ss:$0 sps:$4 sm:$0xff]   ;;  %s694_s5 = sshll.u32 %s1202_s4, 3  ;;  %s729_s6 = sshll.u32 %s1031_s15, 7 }
  0x3f   : > { %s1175_s30 = scalar_lea.vmem %s1290_s0, %s801_s28  ;;  %v460_v33 = vsel %vm293_vm1, %v896_v30, 0  ;;  %s205_s7 = scalar_lea.vmem [#allocation5], %s694_s5 }
  0x40   : > { %770 = vmatpush3.bf16.msra.mxu0 %v880_v2  ;;  %v219_v5 = vld [vmem:[%s1175_s30] sm:$0xf]  ;;  %v220_v6 = vld [vmem:[%s1175_s30 + $0x4] sm:$0xf]  ;;  %756 = vmatpush3.bf16.msra.mxu1 %v888_v7  ;;  %s554_s8 = sshll.u32 %s205_s7, 4  ;;  %s1209_s11 = scalar_lea.hbm %s1292_s2, %s729_s6  ;;  %s1211_s8 = int_to_ptr.vmem [resolvable:$true] %s554_s8 }
  0x41   : > { %771 = vmatprep.subr.bf16.mxu0 %v1044_v0  ;;  %v697_v9 = vcombine.low %v219_v5, %v220_v6  ;;  %757 = vmatprep.subr.bf16.mxu1 %v1044_v0  ;;  %v895_v15 = vld [vmem:[%s1175_s30 + $0x8] ss:$0 sps:$4 sm:$0x11]   ;;  %v411_v27 = vld [vmem:[%s1175_s30] sm:$0xe]  ;;  %s535_s18 = scalar_lea.sflag [#allocation4], %s1202_s4 }
  0x42   : > { %v258_v19 = vshll.u32 %v895_v15, 16  ;;  %v711_v28 = vcombine.low %v411_v27, %v220_v6  ;;  %v427_v32 = vrot.slane %v895_v15, 1  ;;  %s925_s19 = scalar_lea.vmem %s1211_s8, 128  ;;  %p1305_p10 = scmp.ne.s32.totalorder %s1298_s22, 0 }
  0x43   : > { %v253_v12 = vshll.u32 %v697_v9, 16  ;;  %v251_v16 = vshrl.u32 %v697_v9, 16  ;;  %p926_p8 = scmp.ne.s32.totalorder %s1211_s8, %s925_s19  ;;  %s1046_s21 = smov [#allocation5]  }
  0x44   : > { %772 = vmatpush3.bf16.msra.mxu0 %v881_v4  ;;  %758 = vmatpush3.bf16.msra.mxu1 %v890_v11  ;;  %v260_v22 = vrot.slane %v258_v19, 1  ;;  %v426_v31 = vrot.slane %v711_v28, 1  ;;  %s929_s23 = sshll.u32 %s1046_s21, 4  ;;  %s930_s23 = int_to_ptr.vmem [resolvable:$false] %s929_s23 }
  0x45   : > { %773 = vmatprep.subr.bf16.mxu0 %v1044_v0  ;;  %v255_v17 = vrot.slane %v253_v12, 1  ;;  %759 = vmatprep.subr.bf16.mxu1 %v1044_v0  ;;  %p927_p11 = pnand %p926_p8, %p1305_p10  ;;  %s931_s26 = scalar_lea.vmem %s930_s23, 256 }
  0x46   : > { %v428_v34 = vsel %vm425_vm4, %v426_v31, %v427_v32  ;;  %p932_p1 = scmp.lt.s32.totalorder %s1211_s8, %s930_s23  ;;  %p933_p3 = scmp.lt.s32.totalorder %s931_s26, %s925_s19 }
  0x47   : > { %v256_v21 = vor.u32 %v255_v17, %v251_v16  ;;  %p928_p13 = pneg %p927_p11 }
  0x48   : > { %774 = vmatpush3.bf16.msra.mxu0 %v882_v8  ;;  %760 = vmatpush3.bf16.msra.mxu1 %v892_v14  ;;  %p934_p5 = por %p933_p3, %p932_p1 }
  0x49   : > { %775 = vmatprep.subr.bf16.mxu0 %v1044_v0  ;;  %761 = vmatprep.subr.bf16.mxu1 %v1044_v0  ;;  %v261_v25 = vsel %vm249_vm3, %v256_v21, %v260_v22 }
  0x4a   : > { %p935_p6 = pnand %p934_p5, %p928_p13 }
  0x4c   : > { %776 = vmatpush3.bf16.msra.mxu0 %v368_v13  ;;  %762 = vmatpush3.bf16.msra.mxu1 %v295_v23 }
  0x4d   : > { %781 = vmatprep.subr.bf16.mxu0 %v1044_v0 }
  0x4f   : > { %778 = vmatmul.mubr.msk.bf16.vlgmr.msra.gmra.mrb[0].mxu0 %vm289_vm2, %v697_v9  ;;  %764 = vmatmul.mubr.msk.bf16.vlgmr.msra.gmra.mrb[0].mxu1 %vm289_vm2, %v261_v25 }
  0x50   : > { %782 = vmatpush3.bf16.msra.mxu0 %v887_v20  ;;  %791 = vmatprep.mubr.msk.bf16.mxu0 %vm1045_vm0, %v1044_v0 }
  0x51   : > { %783 = vmatprep.subr.bf16.mxu0 %v1044_v0 }
  0x54   : > { %784 = vmatpush3.bf16.msra.mxu0 %v889_v24 }
  0x55   : > { %785 = vmatprep.subr.bf16.mxu0 %v1044_v0 }
  0x58   : > { %786 = vmatpush3.bf16.msra.mxu0 %v891_v26 }
  0x59   : > { %787 = vmatprep.subr.bf16.mxu0 %v1044_v0 }
  0x5c   : > { %788 = vmatpush3.bf16.msra.mxu0 %v893_v29 }
  0x5d   : > { %789 = vmatprep.subr.bf16.mxu0 %v1044_v0 }
  0x60   : > { %790 = vmatpush3.bf16.msra.mxu0 %v460_v33 }
  0x63   : > { %792 = vmatmul.mubr.msk.bf16.vlgmr.msra.gmra.mrb[0].mxu0 %vm289_vm2, %v428_v34 }
 0x122   : > { %v331_v35 = vpop.f32.mrb[0].mxu1 }
 0x123   : > { %v765_v36 = vpop.f32.mrb[1].mxu1 }
 0x124   : > { %v334_v37 = vpop.f32.mrb[2].mxu1 }
 0x125   : > { %v766_v38 = vpop.f32.mrb[3].mxu1 }
 0x136   : > { %v496_v39 = vpop.f32.mrb[0].mxu0 }
 0x137   : > { %v795_v40 = vadd.f32 %v496_v39, %v331_v35  ;;  %v793_v41 = vpop.f32.mrb[1].mxu0 }
 0x138   : > { %v499_v42 = vpop.f32.mrb[2].mxu0 }
 0x139   : > { %v796_v43 = vadd.f32 %v499_v42, %v334_v37  ;;  %v794_v44 = vpop.f32.mrb[3].mxu0  ;;  %v522_v45 = vmul.f32 %v795_v40, %v795_v40 }
 0x13b   : > { %v733_v46 = vpack.c.bf16 %v796_v43, %v795_v40  ;;  %v515_v47 = vadd.f32 %v796_v43, %v795_v40  ;;  %v523_v48 = vmul.f32 %v796_v43, %v796_v43 }
 0x13d   : > { %734 = vst [vmem:[%s205_s7] sm:$0xff] %v733_v46   ;;  %v516_v49 = vrot.slane %v515_v47, 4  ;;  %v524_v50 = vadd.f32 %v523_v48, %v522_v45 }
 0x13e   : > { %938 = shalt.err (!%p935_p6)
}
 0x13f   : > { %s939_s28 = scalar_lea.hbm %s1209_s11, 128  ;;  %s943_s30 = scalar_lea.hbm %s1292_s2, 256 }
 0x140   : > { %p940_p7 = scmp.ne.s32.totalorder %s1209_s11, %s939_s28  ;;  %p944_p0 = scmp.lt.u32.totalorder %s1209_s11, %s1292_s2 }
 0x141   : > { %p945_p2 = scmp.lt.u32.totalorder %s943_s30, %s939_s28  ;;  %p947_p8 = scmp.lt.u32.totalorder %s939_s28, %s1209_s11 }
 0x142   : > { %p941_p9 = pnand %p940_p7, %p1305_p10 }
 0x143   : > { %p946_p4 = por %p945_p2, %p944_p0 }
 0x144   : > { %p942_p12 = pneg %p941_p9 }
 0x145   : > { %p948_p11 = por %p947_p8, %p946_p4 }
 0x147   : > { %p949_p13 = pnand %p948_p11, %p942_p12 }
 0x149   : > { %952 = shalt.err (!%p949_p13)
}
 0x14a   : > { %s1047_s7 = smov 64   ;;  %s1048_s9 = smov 4   ;;  %v517_v51 = vadd.f32 %v516_v49, %v515_v47  ;;  %v525_v52 = vrot.slane %v524_v50, 4  ;;  %vm531_vm5 = vcmask 1040384  }
 0x14b   : > { %806 = dma.vmem_to_hbm [thread:$0]  (%p1305_p10), %s1211_s8, 128, %s1209_s11, %s535_s18, %s1047_s7, %s1047_s7, %s1048_s9  }
 0x14c   : > { %v518_v53 = vrot.slane %v517_v51, 2  ;;  %v526_v54 = vadd.f32 %v525_v52, %v524_v50  ;;  %s695_s10 = sshll.u32 %s1202_s4, 1  ;;  %s724_s19 = sshll.u32 %s1031_s15, 5 }
 0x14d   : > { %s212_s21 = scalar_lea.vmem [#allocation6], %s695_s10  ;;  %s1242_s11 = scalar_lea.hbm %s1293_s3, %s724_s19 }
 0x14e   : > { %v519_v55 = vadd.f32 %v518_v53, %v517_v51  ;;  %v527_v56 = vrot.slane %v526_v54, 2  ;;  %s571_s23 = sshll.u32 %s212_s21, 4  ;;  %s540_s18 = scalar_lea.sflag [#allocation7], %s1202_s4  ;;  %s1244_s23 = int_to_ptr.vmem [resolvable:$true] %s571_s23 }
 0x14f   : > { %s953_s28 = scalar_lea.vmem %s1244_s23, 32  ;;  %s1049_s15 = smov [#allocation6]  }
 0x150   : > { %v520_v57 = vrot.slane %v519_v55, 1  ;;  %v528_v58 = vadd.f32 %v527_v56, %v526_v54  ;;  %p954_p1 = scmp.ne.s32.totalorder %s1244_s23, %s953_s28  ;;  %s957_s27 = sshll.u32 %s1049_s15, 4  ;;  %s958_s27 = int_to_ptr.vmem [resolvable:$false] %s957_s27 }
 0x151   : > { %s959_s29 = scalar_lea.vmem %s958_s27, 64  ;;  %p960_p6 = scmp.lt.s32.totalorder %s1244_s23, %s958_s27 }
 0x152   : > { %v529_v59 = vrot.slane %v528_v58, 1  ;;  %v521_v60 = vadd.f32 %v520_v57, %v519_v55  ;;  %p955_p3 = pnand %p954_p1, %p1305_p10  ;;  %p961_p7 = scmp.lt.s32.totalorder %s959_s29, %s953_s28 }
 0x154   : > { %v530_v61 = vadd.f32 %v529_v59, %v528_v58  ;;  %p956_p5 = pneg %p955_p3  ;;  %p962_p9 = por %p961_p7, %p960_p6 }
 0x156   : > { %v532_v62 = vsel %vm531_vm5, %v521_v60, %v530_v61  ;;  %p963_p12 = pnand %p962_p9, %p956_p5 }
 0x157   : > { %533 = vst [vmem:[%s212_s21] sm:$0x3] %v532_v62 }
 0x158   : > { %966 = shalt.err (!%p963_p12)
}
 0x159   : > { %s967_s4 = scalar_lea.hbm %s1242_s11, 32  ;;  %s971_s6 = scalar_lea.hbm %s1293_s3, 64 }
 0x15a   : > { %p968_p0 = scmp.ne.s32.totalorder %s1242_s11, %s967_s4  ;;  %p972_p8 = scmp.lt.u32.totalorder %s1242_s11, %s1293_s3 }
 0x15b   : > { %p973_p11 = scmp.lt.u32.totalorder %s971_s6, %s967_s4  ;;  %p975_p1 = scmp.lt.u32.totalorder %s967_s4, %s1242_s11 }
 0x15c   : > { %p969_p2 = pnand %p968_p0, %p1305_p10 }
 0x15d   : > { %p974_p13 = por %p973_p11, %p972_p8 }
 0x15e   : > { %p970_p4 = pneg %p969_p2 }
 0x15f   : > { %p976_p3 = por %p975_p1, %p974_p13 }
 0x161   : > { %p977_p5 = pnand %p976_p3, %p970_p4 }
 0x163   : > { %980 = shalt.err (!%p977_p5)
}
 0x164   : > { %807 = dma.vmem_to_hbm [thread:$0]  (%p1305_p10), %s1244_s23, 32, %s1242_s11, %s540_s18  }
 0x165 PF: > { %p823_p6 = scmp.ge.s32.totalorder %s1039_s17, 2  ;;  %s583_s10 = sand.u32 1, %s1019_s12  }
 0x166   : > { %p1306_p7 = scmp.ne.s32.totalorder %s1299_s24, 0  ;;  %s584_s19 = scalar_lea.sflag [#allocation4], %s583_s10 }
 0x168   : > { %p815_p9 = pnand %p823_p6, %p1306_p7 }
 0x16a   : > { %1010 = dma.done.wait (!%p815_p9), %s584_s19, 128  }
 0x16b   : > { %1012 = vsyncadd (!%p815_p9), %s584_s19, 4294967168  ;;  %s593_s21 = scalar_lea.sflag [#allocation7], %s583_s10 }
 0x16c   : > { %1014 = dma.done.wait (!%p815_p9), %s593_s21, 32  }
 0x16d   : > { %1016 = vsyncadd (!%p815_p9), %s593_s21, 4294967264  ;;  %s21_s17 = sadd.s32 1, %s1039_s17   ;;  %s1307_s12 = smov %s1023_s13 }
 0x16e   : > { %p18_p12 = scmp.ge.s32.totalorder %s21_s17, 4   ;;  %s1308_s13 = smov %s1027_s14 }
 0x16f   : > { %s1309_s14 = smov %s1123_s25  ;;  %s1310_s15 = smov %s1035_s16 }
 0x170   : > { %s1311_s16 = smov %s1313_s20  ;;  %20 = sbr.rel (!%p18_p12) target bundleno = 7 (0x7), region = 88 }
 0x177   :  { %598 = vsyncpa [#allocation3], 1 }
 0x178   :  { %600 = vsyncpa [#allocation3 + $0x1], 1 }
 0x179   :  { %601 = vsyncpa [#allocation4], 1 }
 0x17a   :  { %603 = vsyncpa [#allocation4 + $0x1], 1 }
 0x17b   :  { %604 = vsyncpa [#allocation7], 1 }
 0x17c   :  { %606 = vsyncpa [#allocation7 + $0x1], 1 }

</bundles_post_ra>
